<compile_context>
chip_gen: v7x
topology: tpu7x:2x2x1
jax: 0.10.0
libtpu: 0.0.40
codegen_flags: <defaults>
</compile_context>

<pallas_src>
import jax
import jax.numpy as jnp
from jax import lax
from jax.experimental import pallas as pl
from jax.experimental.pallas import tpu as pltpu

IN_DIM = 768  # fixed by nn.Linear(768, projection_dim)
_VMEM_LIMIT = 32 * 1024 * 1024  # explicit scoped-VMEM limit (raises v5e's 16 MiB default)


# ---------------------------------------------------------------------------
# Kernel 1: projection + normalization prepass.
#   t_out  = (texts @ W + b) / (||.|| + 1e-8) * exp(logit_scale)   -> bf16
#   im_out = images / (||.|| + 1e-8)                               -> bf16
# ---------------------------------------------------------------------------
def _prepass_kernel(scale_ref,                       # SMEM (1,) = exp(logit_scale)
                    texts_ref, w_ref, b_ref, images_ref,   # VMEM blocks
                    t_out_ref, im_out_ref):                # VMEM bf16 blocks
    # Projection on the MXU: bf16 operands, f32 accumulate.
    t = jnp.dot(texts_ref[...].astype(jnp.bfloat16), w_ref[...],
                preferred_element_type=jnp.float32) + b_ref[...]
    # Normalization math stays f32 (v5e has no bf16 VPU). Scale folded into the
    # per-row reciprocal-norm so the loss kernel never multiplies by it.
    t_norm = jnp.sqrt(jnp.sum(t * t, axis=1, keepdims=True))
    t = t * (pl.reciprocal(t_norm + 1e-8, approx=False) * scale_ref[0])
    t_out_ref[...] = t.astype(jnp.bfloat16)

    im = images_ref[...]
    im_norm = jnp.sqrt(jnp.sum(im * im, axis=1, keepdims=True))
    im = im * pl.reciprocal(im_norm + 1e-8, approx=False)
    im_out_ref[...] = im.astype(jnp.bfloat16)


# ---------------------------------------------------------------------------
# Kernel 2: tiled SigLIP loss.
#   Per (i, j) tile:  sum_rows softplus(logits)  accumulated into the i-th
#   per-row partial-loss block; diagonal correction (-logits_ii) only when
#   i == j. Image axis i is 'parallel', text axis j (reduction) is last and
#   'arbitrary'.
# ---------------------------------------------------------------------------
def _loss_kernel(bias_ref,                 # SMEM (1,) = logit_bias
                 t_ref, im_ref,            # VMEM bf16 blocks: (tk, P), (tq, P)
                 out_ref):                 # VMEM f32 (tq, 1) per-row partial loss
    i = pl.program_id(0)
    j = pl.program_id(1)

    @pl.when(j == 0)
    def _():
        out_ref[...] = jnp.zeros_like(out_ref)

    # logits = im @ t.T, contracting the feature axis directly (no transpose).
    logits = lax.dot_general(im_ref[...], t_ref[...], (((1,), (1,)), ((), ())),
                             preferred_element_type=jnp.float32)
    logits = logits + bias_ref[0]

    # -log_sigmoid(-x) = softplus(x); the +1 labels on the diagonal only need a
    # correction of -logits_ii, applied on diagonal tiles below.
    out_ref[...] += jnp.sum(jnp.logaddexp(logits, 0.0), axis=1, keepdims=True)

    @pl.when(i == j)   # tq == tk, so block-aligned diagonal tiles only
    def _():
        rr = lax.broadcasted_iota(jnp.int32, logits.shape, 0)
        cc = lax.broadcasted_iota(jnp.int32, logits.shape, 1)
        out_ref[...] -= jnp.sum(jnp.where(rr == cc, logits, 0.0),
                                axis=1, keepdims=True)


# ---------------------------------------------------------------------------
# Wrapper
# ---------------------------------------------------------------------------
def projection_head_forward(images, texts, w, b, logit_scale, logit_bias,
                            *, block_rows=512, tq=512, tk=512):
    """images: [N, P] f32, texts: [N, 768] f32, w: [768, P], b: [P]."""
    N, in_dim = texts.shape
    P = w.shape[1]
    assert images.shape == (N, P)

    tr = min(block_rows, N)
    tq = min(tq, N)
    tk = min(tk, N)
    assert N % tr == 0 and N % tq == 0 and N % tk == 0
    assert tq == tk, "diagonal-tile gating assumes aligned square logit blocks"

    # exp(logit_scale) is a one-element op; compute in the wrapper, pass via SMEM.
    scale = jnp.exp(logit_scale.astype(jnp.float32)).reshape(1)
    bias = logit_bias.astype(jnp.float32).reshape(1)
    w_bf16 = w.astype(jnp.bfloat16)
    b2 = b.reshape(1, P).astype(jnp.float32)

    smem = pl.BlockSpec(memory_space=pltpu.MemorySpace.SMEM)

    # --- prepass: project + normalize once ---------------------------------
    t_bf16, im_bf16 = pl.pallas_call(
        _prepass_kernel,
        out_shape=(jax.ShapeDtypeStruct((N, P), jnp.bfloat16),
                   jax.ShapeDtypeStruct((N, P), jnp.bfloat16)),
        grid=(N // tr,),
        in_specs=[
            smem,                                               # exp(logit_scale)
            pl.BlockSpec((tr, in_dim), lambda r: (r, 0)),       # texts block
            pl.BlockSpec((in_dim, P), lambda r: (0, 0)),        # W (resident)
            pl.BlockSpec((1, P), lambda r: (0, 0)),             # proj bias
            pl.BlockSpec((tr, P), lambda r: (r, 0)),            # images block
        ],
        out_specs=(pl.BlockSpec((tr, P), lambda r: (r, 0)),
                   pl.BlockSpec((tr, P), lambda r: (r, 0))),
        compiler_params=pltpu.CompilerParams(
            dimension_semantics=("parallel",),
            vmem_limit_bytes=_VMEM_LIMIT),
    )(scale, texts, w_bf16, b2, images)

    # --- tiled SigLIP loss ---------------------------------------------------
    per_row = pl.pallas_call(
        _loss_kernel,
        out_shape=jax.ShapeDtypeStruct((N, 1), jnp.float32),
        grid=(N // tq, N // tk),
        in_specs=[
            smem,                                               # logit_bias
            pl.BlockSpec((tk, P), lambda i, j: (j, 0)),         # normalized texts
            pl.BlockSpec((tq, P), lambda i, j: (i, 0)),         # normalized images
        ],
        out_specs=pl.BlockSpec((tq, 1), lambda i, j: (i, 0)),   # per-row partials
        compiler_params=pltpu.CompilerParams(
            dimension_semantics=("parallel", "arbitrary"),
            vmem_limit_bytes=_VMEM_LIMIT),
    )(bias, t_bf16, im_bf16)

    return jnp.sum(per_row) / N


# ---------------------------------------------------------------------------
# Pure-JAX reference (f32 everywhere)
# ---------------------------------------------------------------------------
def reference_forward(images, texts, w, b, logit_scale, logit_bias):
    t = texts @ w + b
    t = t / (jnp.linalg.norm(t, axis=1, keepdims=True) + 1e-8)
    im = images / (jnp.linalg.norm(images, axis=1, keepdims=True) + 1e-8)
    logits = im @ t.T * jnp.exp(logit_scale[0]) + logit_bias[0]
    n = logits.shape[0]
    labels = 2.0 * jnp.eye(n) - 1.0
    return -jnp.sum(jax.nn.log_sigmoid(labels * logits)) / n


if __name__ == "__main__":
    PROJ_DIM = 128      # projection_dim (lane-friendly)
    INIT_SCALE = 10.0
    INIT_BIAS = -10.0

    key = jax.random.PRNGKey(0)
    k_t1, k_i1, k_t2, k_i2, k_w, k_b = jax.random.split(key, 6)

    # Deterministic nn.Linear-style init: U(-1/sqrt(fan_in), 1/sqrt(fan_in)).
    bound = 1.0 / jnp.sqrt(jnp.float32(IN_DIM))
    w = jax.random.uniform(k_w, (IN_DIM, PROJ_DIM), jnp.float32, -bound, bound)
    b = jax.random.uniform(k_b, (PROJ_DIM,), jnp.float32, -bound, bound)
    logit_scale = jnp.log(jnp.ones((1,), jnp.float32) * INIT_SCALE)
    logit_bias = jnp.ones((1,), jnp.float32) * INIT_BIAS

    # bf16 MXU operands drift past 1e-5; use a matching looser tolerance.
    RTOL = ATOL = 2e-2

    # --- small batch: single grid step per kernel ---------------------------
    N1 = 16
    texts1 = jax.random.normal(k_t1, (N1, IN_DIM), dtype=jnp.float32)
    images1 = jax.random.normal(k_i1, (N1, PROJ_DIM), dtype=jnp.float32)
    loss1 = jax.block_until_ready(
        projection_head_forward(images1, texts1, w, b, logit_scale, logit_bias))
    ref1 = reference_forward(images1, texts1, w, b, logit_scale, logit_bias)
    assert jnp.allclose(loss1, ref1, rtol=RTOL, atol=ATOL), (loss1, ref1)

    # --- small-but-gridded batch: 2x2 loss grid exercises the j-accumulation,
    #     diagonal pl.when gating, and the 'parallel' image axis --------------
    N2 = 256
    texts2 = jax.random.normal(k_t2, (N2, IN_DIM), dtype=jnp.float32)
    images2 = jax.random.normal(k_i2, (N2, PROJ_DIM), dtype=jnp.float32)
    loss2 = jax.block_until_ready(
        projection_head_forward(images2, texts2, w, b, logit_scale, logit_bias,
                                block_rows=128, tq=128, tk=128))
    ref2 = reference_forward(images2, texts2, w, b, logit_scale, logit_bias)
    assert jnp.allclose(loss2, ref2, rtol=RTOL, atol=ATOL), (loss2, ref2)

    print("KERNEL_OK")
</pallas_src>

<mosaic_0001>
module attributes {stable_mosaic.version = 11 : i64} {
  func.func @_prepass_kernel(%arg0: i32, %arg1: memref<1xf32, #tpu.memory_space<smem>>, %arg2: memref<16x768xf32, #tpu.memory_space<vmem>>, %arg3: memref<768x128xbf16, #tpu.memory_space<vmem>>, %arg4: memref<1x128xf32, #tpu.memory_space<vmem>>, %arg5: memref<16x128xf32, #tpu.memory_space<vmem>>, %arg6: memref<16x128xbf16, #tpu.memory_space<vmem>>, %arg7: memref<16x128xbf16, #tpu.memory_space<vmem>>) attributes {dimension_semantics = [#tpu.dimension_semantics<parallel>], iteration_bounds = array<i64: 1>, scalar_prefetch = 0 : i64, scratch_operands = 0 : i64, tpu.core_type = #tpu.core_type<tc>, window_params = [{transform_indices = @transform_0, window_bounds = array<i64: 1>}, {transform_indices = @transform_1, window_bounds = array<i64: 16, 768>}, {pipeline_mode = #tpu.pipeline_mode<synchronous>, transform_indices = @transform_2, window_bounds = array<i64: 768, 128>}, {pipeline_mode = #tpu.pipeline_mode<synchronous>, transform_indices = @transform_3, window_bounds = array<i64: 1, 128>}, {transform_indices = @transform_4, window_bounds = array<i64: 16, 128>}, {transform_indices = @transform_5, window_bounds = array<i64: 16, 128>}, {transform_indices = @transform_6, window_bounds = array<i64: 16, 128>}]} {
    %c0 = arith.constant 0 : index
    %c0_0 = arith.constant 0 : index
    %0 = vector.load %arg2[%c0, %c0_0] : memref<16x768xf32, #tpu.memory_space<vmem>>, vector<16x768xf32>
    %1 = arith.truncf %0 : vector<16x768xf32> to vector<16x768xbf16>
    %c0_1 = arith.constant 0 : index
    %c0_2 = arith.constant 0 : index
    %2 = vector.load %arg3[%c0_1, %c0_2] : memref<768x128xbf16, #tpu.memory_space<vmem>>, vector<768x128xbf16>
    %cst = arith.constant dense<0.000000e+00> : vector<16x128xf32>
    %3 = tpu.matmul %1, %2, %cst {dimension_numbers = #tpu.dot_dimension_numbers<[1], [0], [0], [1], [0, 0, 1, 1], [], []>} : vector<16x768xbf16>, vector<768x128xbf16>, vector<16x128xf32> -> vector<16x128xf32>
    %c0_3 = arith.constant 0 : index
    %c0_4 = arith.constant 0 : index
    %4 = vector.load %arg4[%c0_3, %c0_4] : memref<1x128xf32, #tpu.memory_space<vmem>>, vector<1x128xf32>
    %5 = vector.broadcast %4 : vector<1x128xf32> to vector<16x128xf32>
    %6 = arith.addf %3, %5 : vector<16x128xf32>
    %7 = arith.mulf %6, %6 : vector<16x128xf32>
    %cst_5 = arith.constant dense<0.000000e+00> : vector<16xf32>
    %8 = vector.multi_reduction <add>, %7, %cst_5 [1] : vector<16x128xf32> to vector<16xf32>
    %9 = vector.shape_cast %8 : vector<16xf32> to vector<16x1xf32>
    %10 = math.sqrt %9 : vector<16x1xf32>
    %cst_6 = arith.constant 9.99999993E-9 : f32
    %11 = vector.broadcast %cst_6 : f32 to vector<16x1xf32>
    %12 = arith.addf %10, %11 : vector<16x1xf32>
    %13 = tpu.reciprocal %12 : vector<16x1xf32> -> vector<16x1xf32>
    %c0_7 = arith.constant 0 : index
    %14 = memref.load %arg1[%c0_7] : memref<1xf32, #tpu.memory_space<smem>>
    %15 = vector.broadcast %14 : f32 to vector<16x1xf32>
    %16 = arith.mulf %13, %15 : vector<16x1xf32>
    %17 = vector.broadcast %16 : vector<16x1xf32> to vector<16x128xf32>
    %18 = arith.mulf %6, %17 : vector<16x128xf32>
    %19 = arith.truncf %18 : vector<16x128xf32> to vector<16x128xbf16>
    %c0_8 = arith.constant 0 : index
    %c0_9 = arith.constant 0 : index
    %20 = vector.load %arg6[%c0_8, %c0_9] : memref<16x128xbf16, #tpu.memory_space<vmem>>, vector<16x128xbf16>
    tpu.vector_store %arg6[%c0_8, %c0_9], %19 {strides = array<i32>} : memref<16x128xbf16, #tpu.memory_space<vmem>>, vector<16x128xbf16>,
    %c0_10 = arith.constant 0 : index
    %c0_11 = arith.constant 0 : index
    %21 = vector.load %arg5[%c0_10, %c0_11] : memref<16x128xf32, #tpu.memory_space<vmem>>, vector<16x128xf32>
    %22 = arith.mulf %21, %21 : vector<16x128xf32>
    %cst_12 = arith.constant dense<0.000000e+00> : vector<16xf32>
    %23 = vector.multi_reduction <add>, %22, %cst_12 [1] : vector<16x128xf32> to vector<16xf32>
    %24 = vector.shape_cast %23 : vector<16xf32> to vector<16x1xf32>
    %25 = math.sqrt %24 : vector<16x1xf32>
    %cst_13 = arith.constant 9.99999993E-9 : f32
    %26 = vector.broadcast %cst_13 : f32 to vector<16x1xf32>
    %27 = arith.addf %25, %26 : vector<16x1xf32>
    %28 = tpu.reciprocal %27 : vector<16x1xf32> -> vector<16x1xf32>
    %29 = vector.broadcast %28 : vector<16x1xf32> to vector<16x128xf32>
    %30 = arith.mulf %21, %29 : vector<16x128xf32>
    %31 = arith.truncf %30 : vector<16x128xf32> to vector<16x128xbf16>
    %c0_14 = arith.constant 0 : index
    %c0_15 = arith.constant 0 : index
    %32 = vector.load %arg7[%c0_14, %c0_15] : memref<16x128xbf16, #tpu.memory_space<vmem>>, vector<16x128xbf16>
    tpu.vector_store %arg7[%c0_14, %c0_15], %31 {strides = array<i32>} : memref<16x128xbf16, #tpu.memory_space<vmem>>, vector<16x128xbf16>,
    return
  }
  func.func @transform_0(%arg0: i32) -> i32 {
    %c0_i32 = arith.constant 0 : i32
    %c0_i32_0 = arith.constant 0 : i32
    return %c0_i32 : i32
  }
  func.func @transform_1(%arg0: i32) -> (i32, i32) {
    %c0_i32 = arith.constant 0 : i32
    %c0_i32_0 = arith.constant 0 : i32
    return %arg0, %c0_i32 : i32, i32
  }
  func.func @transform_2(%arg0: i32) -> (i32, i32) {
    %c0_i32 = arith.constant 0 : i32
    %c0_i32_0 = arith.constant 0 : i32
    %c0_i32_1 = arith.constant 0 : i32
    return %c0_i32, %c0_i32_0 : i32, i32
  }
  func.func @transform_3(%arg0: i32) -> (i32, i32) {
    %c0_i32 = arith.constant 0 : i32
    %c0_i32_0 = arith.constant 0 : i32
    %c0_i32_1 = arith.constant 0 : i32
    return %c0_i32, %c0_i32_0 : i32, i32
  }
  func.func @transform_4(%arg0: i32) -> (i32, i32) {
    %c0_i32 = arith.constant 0 : i32
    %c0_i32_0 = arith.constant 0 : i32
    return %arg0, %c0_i32 : i32, i32
  }
  func.func @transform_5(%arg0: i32) -> (i32, i32) {
    %c0_i32 = arith.constant 0 : i32
    %c0_i32_0 = arith.constant 0 : i32
    return %arg0, %c0_i32 : i32, i32
  }
  func.func @transform_6(%arg0: i32) -> (i32, i32) {
    %c0_i32 = arith.constant 0 : i32
    %c0_i32_0 = arith.constant 0 : i32
    return %arg0, %c0_i32 : i32, i32
  }
}

</mosaic_0001>

<bundles_post_ra>
// kernel: tpu_custom_call.1
= control target key start
LH: loop header
LB: loop body
LE: loop exit
PB: predicated region body
PF: predicated region fallthrough
CT: control target
= control target key end

     0   :  { %13 = vsyncpa [#allocation4], 0  ;;  %s1168_s0 = inlined_call_operand.<no memory space> [shape: f32[1], index: 0, kind: input, shape index: {}]   ;;  %s1169_s1 = inlined_call_operand.hbm [shape: f32[16,768], index: 1, kind: input, shape index: {}]   ;;  %s1170_s2 = inlined_call_operand.hbm [shape: bf16[768,128], index: 2, kind: input, shape index: {}]   ;;  %s1171_s3 = inlined_call_operand.vmem [shape: f32[1,128], index: 3, kind: input, shape index: {}]   ;;  %s1172_s4 = inlined_call_operand.hbm [shape: f32[16,128], index: 4, kind: input, shape index: {}]   ;;  %s1173_s5 = inlined_call_operand.hbm [shape: bf16[16,128], index: 5, kind: output, shape index: {0}]   ;;  %s1174_s6 = inlined_call_operand.hbm [shape: bf16[16,128], index: 6, kind: output, shape index: {1}]  }
   0x1   :  { %14 = vsyncpa [#allocation7], 0 }
   0x2   :  { %15 = vsyncpa [#allocation5], 0 }
   0x3   :  { %16 = vsyncpa [#allocation11], 0  ;;  %s1037_s21 = smov [#allocation6]   ;;  %s919_s25 = scalar_lea.hbm %s1170_s2, 6144 }
   0x4   :  { %s36_s22 = sshll.u32 %s1037_s21, 4  ;;  %p920_p0 = scmp.ne.s32.totalorder %s1170_s2, %s919_s25  ;;  %s37_s22 = int_to_ptr.vmem [resolvable:$true] %s36_s22 }
   0x5   :  { %p923_p1 = scmp.lt.u32.totalorder %s919_s25, %s1170_s2 }
   0x7   :  { %p925_p2 = pnand %p923_p1, %p920_p0 }
   0x9   :  { %928 = shalt.err (!%p925_p2)
}
   0xa   :  { %s929_s30 = scalar_lea.vmem %s37_s22, 6144  ;;  %p934_p4 = scmp.lt.s32.totalorder %s37_s22, %s37_s22 }
   0xb   :  { %p930_p3 = scmp.ne.s32.totalorder %s37_s22, %s929_s30  ;;  %p935_p5 = scmp.lt.s32.totalorder %s929_s30, %s929_s30 }
   0xd   :  { %p936_p6 = por %p935_p5, %p934_p4 }
   0xf   :  { %p937_p7 = pnand %p936_p6, %p930_p3 }
  0x11   :  { %940 = shalt.err (!%p937_p7)
}
  0x12   :  { %s1038_s7 = smov 64   ;;  %s1039_s8 = smov 4  }
  0x13   :  { %42 = dma.hbm_to_vmem [thread:$0]  %s1170_s2, 6144, %s37_s22, [#allocation7], %s1038_s7, %s1038_s7, %s1039_s8  }
  0x14   :  { %s1040_s11 = smov [#allocation3]   ;;  %s941_s15 = scalar_lea.hbm %s1169_s1, 1536 }
  0x15   :  { %s24_s12 = sshll.u32 %s1040_s11, 4  ;;  %p942_p8 = scmp.ne.s32.totalorder %s1169_s1, %s941_s15  ;;  %s25_s12 = int_to_ptr.vmem [resolvable:$true] %s24_s12 }
  0x16   :  { %p945_p9 = scmp.lt.u32.totalorder %s941_s15, %s1169_s1 }
  0x18   :  { %p947_p10 = pnand %p945_p9, %p942_p8 }
  0x1a   :  { %950 = shalt.err (!%p947_p10)
}
  0x1b   :  { %s951_s20 = scalar_lea.vmem %s25_s12, 1536  ;;  %p956_p12 = scmp.lt.s32.totalorder %s25_s12, %s25_s12 }
  0x1c   :  { %p952_p11 = scmp.ne.s32.totalorder %s25_s12, %s951_s20  ;;  %p957_p13 = scmp.lt.s32.totalorder %s951_s20, %s951_s20 }
  0x1e   :  { %p958_p0 = por %p957_p13, %p956_p12 }
  0x20   :  { %p959_p1 = pnand %p958_p0, %p952_p11 }
  0x22   :  { %962 = shalt.err (!%p959_p1)
}
  0x23   :  { %s1041_s2 = smov 768   ;;  %s1042_s21 = smov 48  }
  0x24   :  { %30 = dma.hbm_to_vmem [thread:$0]  %s1169_s1, 1536, %s25_s12, [#allocation4], %s1041_s2, %s1041_s2, %s1042_s21  }
  0x25   :  { %s1043_s24 = smov [#allocation8]   ;;  %s963_s28 = scalar_lea.hbm %s1172_s4, 256 }
  0x26   :  { %s50_s25 = sshll.u32 %s1043_s24, 4  ;;  %p964_p2 = scmp.ne.s32.totalorder %s1172_s4, %s963_s28  ;;  %s51_s25 = int_to_ptr.vmem [resolvable:$true] %s50_s25 }
  0x27   :  { %p967_p3 = scmp.lt.u32.totalorder %s963_s28, %s1172_s4 }
  0x29   :  { %p969_p4 = pnand %p967_p3, %p964_p2 }
  0x2b   :  { %972 = shalt.err (!%p969_p4)
}
  0x2c   :  { %s973_s11 = scalar_lea.vmem %s51_s25, 256  ;;  %p978_p6 = scmp.lt.s32.totalorder %s51_s25, %s51_s25 }
  0x2d   :  { %p974_p5 = scmp.ne.s32.totalorder %s51_s25, %s973_s11  ;;  %p979_p7 = scmp.lt.s32.totalorder %s973_s11, %s973_s11 }
  0x2f   :  { %p980_p8 = por %p979_p7, %p978_p6 }
  0x31   :  { %p981_p9 = pnand %p980_p8, %p974_p5 }
  0x33   :  { %984 = shalt.err (!%p981_p9)
}
  0x34   :  { %s1044_s1 = smov 128   ;;  %s1045_s12 = smov 8  }
  0x35   :  { %56 = dma.hbm_to_vmem [thread:$0]  %s1172_s4, 256, %s51_s25, [#allocation7], %s1044_s1, %s1044_s1, %s1045_s12  }
  0x36   :  { %1029 = dma.done.wait [#allocation4], 1536  }
  0x37   :  { %1030 = vsyncadd [#allocation4], 4294965760 }
  0x38   :  { %1031 = dma.done.wait [#allocation7], 6400  }
  0x39   :  { %1032 = vsyncadd [#allocation7], 4294960896  ;;  %v855_v0 = vld [vmem:[#allocation6 + $0x40] sm:$0xff]   ;;  %v859_v4 = vld [vmem:[#allocation6 + $0x48] sm:$0xff]  }
  0x3a   :  { %v856_v1 = vld [vmem:[#allocation6] sm:$0xff]   ;;  %778 = vmatprep.subr.bf16.mxu0 %v855_v0  ;;  %v860_v5 = vld [vmem:[#allocation6 + $0x8] sm:$0xff]   ;;  %v863_v8 = vld [vmem:[#allocation6 + $0x50] sm:$0xff]  }
  0x3b   :  { %v857_v2 = vld [vmem:[#allocation6 + $0xc0] sm:$0xff]   ;;  %779 = vmatpush3.bf16.msra.mxu0 %v856_v1  ;;  %v861_v6 = vld [vmem:[#allocation6 + $0xc8] sm:$0xff]   ;;  %v864_v9 = vld [vmem:[#allocation6 + $0x10] sm:$0xff]  }
  0x3c   :  { %v858_v3 = vld [vmem:[#allocation6 + $0x80] sm:$0xff]   ;;  %800 = vmatprep.subr.bf16.mxu1 %v857_v2  ;;  %780 = vmatprep.subr.bf16.mxu0 %v859_v4  ;;  %v862_v7 = vld [vmem:[#allocation6 + $0x88] sm:$0xff]   ;;  %v865_v10 = vld [vmem:[#allocation6 + $0xd0] sm:$0xff]  }
  0x3d   :  { %801 = vmatpush3.bf16.msra.mxu1 %v858_v3  ;;  %v866_v11 = vld [vmem:[#allocation6 + $0x90] sm:$0xff]   ;;  %v867_v12 = vld [vmem:[#allocation6 + $0x58] sm:$0xff]   ;;  %v871_v16 = vld [vmem:[#allocation6 + $0x60] sm:$0xff]  }
  0x3e   :  { %802 = vmatprep.subr.bf16.mxu1 %v861_v6  ;;  %v868_v13 = vld [vmem:[#allocation6 + $0x18] sm:$0xff]   ;;  %v872_v17 = vld [vmem:[#allocation6 + $0x20] sm:$0xff]   ;;  %v875_v20 = vld [vmem:[#allocation6 + $0x68] sm:$0xff]  }
  0x3f   :  { %781 = vmatpush3.bf16.msra.mxu0 %v860_v5  ;;  %v869_v14 = vld [vmem:[#allocation6 + $0xd8] sm:$0xff]   ;;  %v873_v18 = vld [vmem:[#allocation6 + $0xe0] sm:$0xff]   ;;  %v876_v21 = vld [vmem:[#allocation6 + $0x28] sm:$0xff]  }
  0x40   :  { %782 = vmatprep.subr.bf16.mxu0 %v863_v8  ;;  %v870_v15 = vld [vmem:[#allocation6 + $0x98] sm:$0xff]   ;;  %v874_v19 = vld [vmem:[#allocation6 + $0xa0] sm:$0xff]   ;;  %v877_v22 = vld [vmem:[#allocation6 + $0xe8] sm:$0xff]  }
  0x41   :  { %803 = vmatpush3.bf16.msra.mxu1 %v862_v7  ;;  %v878_v23 = vld [vmem:[#allocation6 + $0xa8] sm:$0xff]   ;;  %v879_v24 = vld [vmem:[#allocation6 + $0x70] sm:$0xff]   ;;  %v883_v28 = vld [vmem:[#allocation6 + $0x78] sm:$0xff]  }
  0x42   :  { %804 = vmatprep.subr.bf16.mxu1 %v865_v10  ;;  %v880_v25 = vld [vmem:[#allocation6 + $0x30] sm:$0xff]   ;;  %v884_v29 = vld [vmem:[#allocation6 + $0x38] sm:$0xff]   ;;  %v68_v31 = vld [vmem:[#allocation3 + $0x8] sm:$0xff] }
  0x43   :  { %783 = vmatpush3.bf16.msra.mxu0 %v864_v9  ;;  %v881_v26 = vld [vmem:[#allocation6 + $0xf0] sm:$0xff]   ;;  %v885_v30 = vld [vmem:[#allocation6 + $0xf8] sm:$0xff]   ;;  %v67_v35 = vld [vmem:[#allocation3] sm:$0xff] }
  0x44   :  { %784 = vmatprep.subr.bf16.mxu0 %v867_v12  ;;  %v882_v27 = vld [vmem:[#allocation6 + $0xb0] sm:$0xff]   ;;  %v74_v32 = vld [vmem:[#allocation3 + $0x38] sm:$0xff]  ;;  %v887_v38 = vld [vmem:[#allocation6 + $0x140] sm:$0xff]  }
  0x45   :  { %805 = vmatpush3.bf16.msra.mxu1 %v866_v11  ;;  %v80_v33 = vpack.c.bf16 %v74_v32, %v68_v31  ;;  %v886_v34 = vld [vmem:[#allocation6 + $0xb8] sm:$0xff]   ;;  %v73_v36 = vld [vmem:[#allocation3 + $0x30] sm:$0xff]  ;;  %v76_v40 = vld [vmem:[#allocation3 + $0x48] sm:$0xff] }
  0x46   :  { %806 = vmatprep.subr.bf16.mxu1 %v869_v14  ;;  %v79_v37 = vpack.c.bf16 %v73_v36, %v67_v35  ;;  %v70_v39 = vld [vmem:[#allocation3 + $0x18] sm:$0xff]  ;;  %v888_v42 = vld [vmem:[#allocation6 + $0x100] sm:$0xff]   ;;  %v69_v43 = vld [vmem:[#allocation3 + $0x10] sm:$0xff] }
  0x47   :  { %785 = vmatpush3.bf16.msra.mxu0 %v868_v13  ;;  %508 = vmatprep.mubr.bf16.mxu0 %v80_v33  ;;  %v82_v41 = vpack.c.bf16 %v76_v40, %v70_v39  ;;  %v75_v44 = vld [vmem:[#allocation3 + $0x40] sm:$0xff]  ;;  %v889_v46 = vld [vmem:[#allocation6 + $0x148] sm:$0xff]   ;;  %v891_v48 = vld [vmem:[#allocation6 + $0x150] sm:$0xff]  }
  0x48   :  { %786 = vmatprep.subr.bf16.mxu0 %v871_v16  ;;  %v81_v45 = vpack.c.bf16 %v75_v44, %v69_v43  ;;  %v890_v47 = vld [vmem:[#allocation6 + $0x108] sm:$0xff]   ;;  %v892_v49 = vld [vmem:[#allocation6 + $0x110] sm:$0xff]   ;;  %v893_v50 = vld [vmem:[#allocation6 + $0x158] sm:$0xff]  }
  0x49   :  { %807 = vmatpush3.bf16.msra.mxu1 %v870_v15  ;;  %549 = vmatprep.mubr.bf16.mxu1 %v82_v41  ;;  %v894_v51 = vld [vmem:[#allocation6 + $0x118] sm:$0xff]   ;;  %v895_v52 = vld [vmem:[#allocation6 + $0x160] sm:$0xff]   ;;  %v897_v54 = vld [vmem:[#allocation6 + $0x168] sm:$0xff]  }
  0x4a   :  { %808 = vmatprep.subr.bf16.mxu1 %v873_v18  ;;  %v896_v53 = vld [vmem:[#allocation6 + $0x120] sm:$0xff]   ;;  %v72_v55 = vld [vmem:[#allocation3 + $0x28] sm:$0xff]  ;;  %v78_v56 = vld [vmem:[#allocation3 + $0x58] sm:$0xff] }
  0x4b   :  { %787 = vmatpush3.bf16.msra.mxu0 %v872_v17  ;;  %v84_v57 = vpack.c.bf16 %v78_v56, %v72_v55  ;;  %v898_v58 = vld [vmem:[#allocation6 + $0x128] sm:$0xff]   ;;  %v899_v59 = vld [vmem:[#allocation6 + $0x170] sm:$0xff]   ;;  %v901_v61 = vld [vmem:[#allocation6 + $0x178] sm:$0xff]  }
  0x4c   :  { %788 = vmatprep.subr.bf16.mxu0 %v875_v20  ;;  %v900_v60 = vld [vmem:[#allocation6 + $0x130] sm:$0xff]   ;;  %v902_v62 = vld [vmem:[#allocation6 + $0x138] sm:$0xff]   ;;  %v71_v63 = vld [vmem:[#allocation3 + $0x20] sm:$0xff] }
  0x4d   :  { %809 = vmatpush3.bf16.msra.mxu1 %v874_v19  ;;  %v77_v0 = vld [vmem:[#allocation3 + $0x50] sm:$0xff]  ;;  %v639_v2 = vld [vmem:[#allocation8] sm:$0xff]  ;;  %v640_v3 = vld [vmem:[#allocation8 + $0x8] sm:$0xff] }
  0x4e   :  { %810 = vmatprep.subr.bf16.mxu1 %v877_v22  ;;  %v83_v1 = vpack.c.bf16 %v77_v0, %v71_v63  ;;  %v641_v4 = vmul.f32 %v639_v2, %v639_v2  ;;  %v642_v5 = vmul.f32 %v640_v3, %v640_v3  ;;  %v711_v7 = vld [vmem:[%s1171_s3] ss:$0 sm:$0xff]  ;;  %s1046_s3 = smov [#allocation10]  }
  0x4f   :  { %789 = vmatpush3.bf16.msra.mxu0 %v876_v21  ;;  %s694_s16 = sshll.u32 %s1046_s3, 4  ;;  %s695_s16 = int_to_ptr.vmem [resolvable:$true] %s694_s16 }
  0x50   :  { %790 = vmatprep.subr.bf16.mxu0 %v879_v24  ;;  %643 = vadd.xlane.f32.xlu1 %v641_v4  ;;  %s985_s17 = scalar_lea.vmem %s695_s16, 128  ;;  %p990_p11 = scmp.lt.s32.totalorder %s695_s16, %s695_s16 }
  0x51   :  { %811 = vmatpush3.bf16.msra.mxu1 %v878_v23  ;;  %p986_p10 = scmp.ne.s32.totalorder %s695_s16, %s985_s17  ;;  %p991_p12 = scmp.lt.s32.totalorder %s985_s17, %s985_s17 }
  0x52   :  { %812 = vmatprep.subr.bf16.mxu1 %v881_v26 }
  0x53   :  { %791 = vmatpush3.bf16.msra.mxu0 %v880_v25  ;;  %p992_p13 = por %p991_p12, %p990_p11 }
  0x54   :  { %792 = vmatprep.subr.bf16.mxu0 %v883_v28  ;;  %645 = vadd.xlane.f32.xlu1 %v642_v5 }
  0x55   :  { %813 = vmatpush3.bf16.msra.mxu1 %v882_v27  ;;  %p993_p0 = pnand %p992_p13, %p986_p10 }
  0x56   :  { %814 = vmatprep.subr.bf16.mxu1 %v885_v30 }
  0x57   :  { %793 = vmatpush3.bf16.msra.mxu0 %v884_v29 }
  0x58   :  { %822 = vmatprep.subr.bf16.mxu0 %v887_v38 }
  0x59   :  { %815 = vmatpush3.bf16.msra.mxu1 %v886_v34 }
  0x5a   :  { %509 = vmatmul.mubr.bf16.vlgmr.msra.gmra.mrb[0].mxu0 %v79_v37 }
  0x5b   :  { %823 = vmatpush3.bf16.msra.mxu0 %v888_v42  ;;  %590 = vmatprep.mubr.bf16.mxu0 %v84_v57 }
  0x5c   :  { %550 = vmatmul.mubr.bf16.vlgmr.msra.gmra.mrb[0].mxu1 %v81_v45  ;;  %824 = vmatprep.subr.bf16.mxu0 %v889_v46 }
  0x5f   :  { %825 = vmatpush3.bf16.msra.mxu0 %v890_v47 }
  0x60   :  { %826 = vmatprep.subr.bf16.mxu0 %v891_v48 }
  0x63   :  { %827 = vmatpush3.bf16.msra.mxu0 %v892_v49 }
  0x64   :  { %828 = vmatprep.subr.bf16.mxu0 %v893_v50 }
  0x67   :  { %829 = vmatpush3.bf16.msra.mxu0 %v894_v51 }
  0x68   :  { %830 = vmatprep.subr.bf16.mxu0 %v895_v52 }
  0x6b   :  { %831 = vmatpush3.bf16.msra.mxu0 %v896_v53 }
  0x6c   :  { %832 = vmatprep.subr.bf16.mxu0 %v897_v54 }
  0x6f   :  { %833 = vmatpush3.bf16.msra.mxu0 %v898_v58 }
  0x70   :  { %834 = vmatprep.subr.bf16.mxu0 %v899_v59 }
  0x73   :  { %835 = vmatpush3.bf16.msra.mxu0 %v900_v60 }
  0x74   :  { %836 = vmatprep.subr.bf16.mxu0 %v901_v61 }
  0x77   :  { %837 = vmatpush3.bf16.msra.mxu0 %v902_v62 }
  0x7a   :  { %591 = vmatmul.mubr.bf16.vlgmr.msra.gmra.mrb[4].mxu0 %v83_v1 }
  0xdd   :  { %v644_v23 = vpop.xlane.xlu1 %643 }
  0xde   :  { %903 = vrsqrt.f32 %v644_v23  ;;  %vm649_vm0 = vcmp.eq.f32.partialorder %v644_v23, inf  ;;  %v652_v39 = vand.u32 2147483648, %v644_v23  ;;  %vm651_vm2 = vcmp.eq.f32.partialorder %v644_v23, 0.0 }
  0xe1   :  { %v646_v24 = vpop.xlane.xlu1 %645 }
  0xe2   :  { %905 = vrsqrt.f32 %v646_v24  ;;  %vm656_vm1 = vcmp.eq.f32.partialorder %v646_v24, inf  ;;  %v659_v41 = vand.u32 2147483648, %v646_v24  ;;  %vm658_vm3 = vcmp.eq.f32.partialorder %v646_v24, 0.0 }
  0xe8   :  { %v904_v34 = vpop.eup %903 }
  0xe9   :  { %v648_v37 = vmul.f32 %v904_v34, %v644_v23 }
  0xeb   :  { %v650_v40 = vsel %vm649_vm0, %v644_v23, %v648_v37 }
  0xec   :  { %v906_v35 = vpop.eup %905  ;;  %v653_v43 = vsel %vm651_vm2, %v652_v39, %v650_v40 }
  0xed   :  { %v655_v38 = vmul.f32 %v906_v35, %v646_v24  ;;  %v661_v45 = vadd.f32 1e-08, %v653_v43 }
  0xef   :  { %v657_v42 = vsel %vm656_vm1, %v646_v24, %v655_v38  ;;  %907 = vrcp.f32 %v661_v45 }
  0xf0   :  { %v660_v44 = vsel %vm658_vm3, %v659_v41, %v657_v42 }
  0xf1   :  { %v662_v46 = vadd.f32 1e-08, %v660_v44 }
  0xf3   :  { %909 = vrcp.f32 %v662_v46 }
  0xf9   :  { %v908_v47 = vpop.eup %907 }
  0xfa   :  { %v665_v49 = vmul.f32 %v908_v47, %v639_v2 }
  0xfd   :  { %v910_v48 = vpop.eup %909 }
  0xfe   :  { %v666_v50 = vmul.f32 %v910_v48, %v640_v3 }
 0x100   :  { %v776_v51 = vpack.c.bf16 %v666_v50, %v665_v49 }
 0x102   :  { %777 = vst [vmem:[#allocation10] sm:$0xff] %v776_v51  }
 0x12d   :  { %v794_v6 = vpop.f32.mrb[0].mxu0 }
 0x12e   :  { %v795_v8 = vpop.f32.mrb[1].mxu0 }
 0x12f   :  { %v796_v9 = vadd.f32 %v795_v8, %v794_v6  ;;  %v797_v10 = vpop.f32.mrb[2].mxu0  ;;  %v816_v11 = vpop.f32.mrb[0].mxu1 }
 0x130   :  { %v798_v12 = vpop.f32.mrb[3].mxu0  ;;  %v817_v15 = vpop.f32.mrb[1].mxu1 }
 0x131   :  { %v511_v13 = vadd.f32 %v796_v9, %v711_v7  ;;  %v799_v14 = vadd.f32 %v798_v12, %v797_v10  ;;  %v818_v16 = vadd.f32 %v817_v15, %v816_v11  ;;  %v819_v17 = vpop.f32.mrb[2].mxu1 }
 0x132   :  { %v820_v19 = vpop.f32.mrb[3].mxu1 }
 0x133   :  { %v514_v18 = vadd.f32 %v799_v14, %v711_v7  ;;  %v552_v20 = vadd.f32 %v818_v16, %v511_v13  ;;  %v821_v21 = vadd.f32 %v820_v19, %v819_v17 }
 0x135   :  { %v555_v22 = vadd.f32 %v821_v21, %v514_v18 }
 0x14d   :  { %v838_v25 = vpop.f32.mrb[4].mxu0 }
 0x14e   :  { %v839_v26 = vpop.f32.mrb[5].mxu0 }
 0x14f   :  { %v840_v27 = vadd.f32 %v839_v26, %v838_v25  ;;  %v841_v28 = vpop.f32.mrb[6].mxu0 }
 0x150   :  { %v842_v29 = vpop.f32.mrb[7].mxu0 }
 0x151   :  { %v843_v30 = vadd.f32 %v842_v29, %v841_v28  ;;  %v1125_v31 = vadd.f32 %v840_v27, %v552_v20 }
 0x153   :  { %v1127_v32 = vadd.f32 %v843_v30, %v555_v22  ;;  %v599_v33 = vmul.f32 %v1125_v31, %v1125_v31 }
 0x155   :  { %601 = vadd.xlane.f32.xlu0 %v599_v33  ;;  %v600_v36 = vmul.f32 %v1127_v32, %v1127_v32 }
 0x159   :  { %603 = vadd.xlane.f32.xlu0 %v600_v36 }
 0x15a   :  { %996 = shalt.err (!%p993_p0)
}
 0x15b   :  { %s997_s20 = scalar_lea.hbm %s1174_s6, 128 }
 0x15c   :  { %p998_p1 = scmp.ne.s32.totalorder %s1174_s6, %s997_s20  ;;  %p1001_p2 = scmp.lt.u32.totalorder %s997_s20, %s1174_s6 }
 0x15e   :  { %p1003_p3 = pnand %p1001_p2, %p998_p1 }
 0x160   :  { %1006 = shalt.err (!%p1003_p3)
}
 0x161   :  { %700 = dma.vmem_to_hbm [thread:$0]  %s695_s16, 128, %s1174_s6, [#allocation11], %s1038_s7, %s1038_s7, %s1039_s8  }
 0x162   :  { %v624_v3 = vstv %s1168_s0  ;;  %s1047_s27 = smov [#allocation9]  }
 0x163   :  { %s682_s28 = sshll.u32 %s1047_s27, 4  ;;  %s683_s28 = int_to_ptr.vmem [resolvable:$true] %s682_s28 }
 0x164   :  { %s1007_s29 = scalar_lea.vmem %s683_s28, 128  ;;  %p1012_p5 = scmp.lt.s32.totalorder %s683_s28, %s683_s28 }
 0x165   :  { %p1008_p4 = scmp.ne.s32.totalorder %s683_s28, %s1007_s29  ;;  %p1013_p6 = scmp.lt.s32.totalorder %s1007_s29, %s1007_s29 }
 0x167   :  { %p1014_p7 = por %p1013_p6, %p1012_p5 }
 0x169   :  { %p1015_p8 = pnand %p1014_p7, %p1008_p4 }
 0x1e2   :  { %v602_v52 = vpop.xlane.xlu0 %601 }
 0x1e3   :  { %911 = vrsqrt.f32 %v602_v52  ;;  %vm607_vm4 = vcmp.eq.f32.partialorder %v602_v52, inf  ;;  %v610_v56 = vand.u32 2147483648, %v602_v52  ;;  %vm609_vm5 = vcmp.eq.f32.partialorder %v602_v52, 0.0 }
 0x1e6   :  { %v604_v53 = vpop.xlane.xlu0 %603 }
 0x1e7   :  { %913 = vrsqrt.f32 %v604_v53  ;;  %vm614_vm6 = vcmp.eq.f32.partialorder %v604_v53, inf  ;;  %v617_v62 = vand.u32 2147483648, %v604_v53  ;;  %vm616_vm7 = vcmp.eq.f32.partialorder %v604_v53, 0.0 }
 0x1ed   :  { %v912_v54 = vpop.eup %911 }
 0x1ee   :  { %v606_v55 = vmul.f32 %v912_v54, %v602_v52 }
 0x1f0   :  { %v608_v57 = vsel %vm607_vm4, %v602_v52, %v606_v55 }
 0x1f1   :  { %v914_v58 = vpop.eup %913  ;;  %v611_v59 = vsel %vm609_vm5, %v610_v56, %v608_v57 }
 0x1f2   :  { %v619_v60 = vadd.f32 1e-08, %v611_v59  ;;  %v613_v61 = vmul.f32 %v914_v58, %v604_v53 }
 0x1f4   :  { %915 = vrcp.f32 %v619_v60  ;;  %v615_v63 = vsel %vm614_vm6, %v604_v53, %v613_v61 }
 0x1f5   :  { %v618_v0 = vsel %vm616_vm7, %v617_v62, %v615_v63 }
 0x1f6   :  { %v620_v1 = vadd.f32 1e-08, %v618_v0 }
 0x1f8   :  { %917 = vrcp.f32 %v620_v1 }
 0x1fe   :  { %v916_v2 = vpop.eup %915 }
 0x1ff   :  { %v625_v4 = vmul.f32 %v916_v2, %v624_v3 }
 0x201   :  { %v627_v7 = vmul.f32 %v625_v4, %v1125_v31 }
 0x202   :  { %v918_v5 = vpop.eup %917 }
 0x203   :  { %v626_v6 = vmul.f32 %v918_v5, %v624_v3 }
 0x205   :  { %v628_v8 = vmul.f32 %v626_v6, %v1127_v32 }
 0x207   :  { %v771_v9 = vpack.c.bf16 %v628_v8, %v627_v7 }
 0x209   :  { %772 = vst [vmem:[#allocation9] sm:$0xff] %v771_v9  }
 0x20a   :  { %1018 = shalt.err (!%p1015_p8)
}
 0x20b   :  { %s1019_s9 = scalar_lea.hbm %s1173_s5, 128 }
 0x20c   :  { %p1020_p9 = scmp.ne.s32.totalorder %s1173_s5, %s1019_s9  ;;  %p1023_p10 = scmp.lt.u32.totalorder %s1019_s9, %s1173_s5 }
 0x20e   :  { %p1025_p11 = pnand %p1023_p10, %p1020_p9 }
 0x210   :  { %1028 = shalt.err (!%p1025_p11)
}
 0x211   :  { %688 = dma.vmem_to_hbm [thread:$0]  %s683_s28, 128, %s1173_s5, [#allocation5], %s1038_s7, %s1038_s7, %s1039_s8  }
 0x212   :  { %1033 = dma.done.wait [#allocation5], 128  }
 0x213   :  { %1034 = vsyncadd [#allocation5], 4294967168 }
 0x214   :  { %1035 = dma.done.wait [#allocation11], 128  }
 0x215   :  { %1036 = vsyncadd [#allocation11], 4294967168 }
 0x216   :  { %707 = vsyncpa [#allocation4], 1 }
 0x217   :  { %708 = vsyncpa [#allocation7], 1 }
 0x218   :  { %709 = vsyncpa [#allocation5], 1 }
 0x219   :  { %710 = vsyncpa [#allocation11], 1 }

</bundles_post_ra>
